<compile_context>
chip_gen: v6e
topology: v6e:2x2x1
jax: 0.10.0
libtpu: 0.0.40
codegen_flags: <defaults>
</compile_context>

<pallas_src>
import numpy as np
import jax
import jax.numpy as jnp
from jax.experimental import pallas as pl
from jax.experimental.pallas import tpu as pltpu


# -----------------------------------------------------------------------------
# helpers
# -----------------------------------------------------------------------------
def _round_up(x, m):
    return (x + m - 1) // m * m


def _choose_block_m(HW, Ci, Cout):
    """Largest spatial (lane) tile fitting a conservative VMEM budget.

    Counts sublane padding (bf16 packs 16 rows per vreg column-pair), the
    double-buffered x / out tiles, and the (small) double-buffered weight.
    Budget keeps total VMEM well under v7x's 64 MiB while being large enough
    to sit near the HBM roofline on v5e/v6e (>= 512 lanes whenever HW allows).
    """
    budget = 24 << 20
    w_bytes = 2 * _round_up(Cout, 16) * _round_up(Ci, 128) * 2        # dbl-buffered bf16 weight
    budget = max(budget - w_bytes, 4 << 20)
    per_col = 2 * (_round_up(Ci, 16) + _round_up(Cout, 16)) * 2       # bf16 x-col + out-col, x2 buffers
    bm = budget // per_col
    bm = max(128, min(bm, 4096))
    bm = (bm // 128) * 128
    if HW <= bm:
        return HW          # one block covering the full spatial extent (block == full dim is legal)
    return bm


def _interp_matrix(in_size, out_size):
    """(out_size, in_size) bilinear align_corners=True interpolation matrix.

    Built with numpy at trace time (compile-time constant). Every row sums to
    1, so interpolation preserves constants — the property that makes folding
    the conv bias into input 0 exact. Guarded by an assertion below.
    """
    A = np.zeros((out_size, in_size), np.float32)
    if out_size == 1:
        src = np.zeros((1,), np.float32)
    else:
        src = np.arange(out_size, dtype=np.float32) * ((in_size - 1) / (out_size - 1))
    lo = np.clip(np.floor(src).astype(np.int32), 0, in_size - 1)
    hi = np.minimum(lo + 1, in_size - 1)
    w_hi = src - lo.astype(np.float32)
    rows = np.arange(out_size)
    np.add.at(A, (rows, lo), 1.0 - w_hi)
    np.add.at(A, (rows, hi), w_hi)
    assert np.allclose(A.sum(axis=1), 1.0), "interp rows must sum to 1 (bias fold)"
    return A


# -----------------------------------------------------------------------------
# Pallas kernel: fused 1x1 conv, weight-stationary channel-major form
#   (Cout, Ci) @ (Ci, block_m) + bias  ->  (Cout, block_m)
# -----------------------------------------------------------------------------
def _fuse_kernel(x_ref, w_ref, b_ref, o_ref):
    acc = jnp.dot(w_ref[...], x_ref[...], preferred_element_type=jnp.float32)
    o_ref[...] = (acc + b_ref[...]).astype(o_ref.dtype)


def conv1x1_nchw_pallas(x, weight_oc, bias_col):
    """x: (N, Ci, HW) bf16, weight_oc: (Cout, Ci) bf16, bias_col: (Cout, 1) f32.
    Returns (N, Cout, HW) bf16."""
    N, Ci, HW = x.shape
    Cout = weight_oc.shape[0]

    block_m = _choose_block_m(HW, Ci, Cout)
    grid = (N, pl.cdiv(HW, block_m))          # ragged last block masked by Pallas

    cost = pl.CostEstimate(
        flops=2 * N * HW * Ci * Cout,
        transcendentals=0,
        bytes_accessed=(N * Ci * HW * 2 + Cout * Ci * 2 + Cout * 4
                        + N * Cout * HW * 2),
    )

    return pl.pallas_call(
        _fuse_kernel,
        out_shape=jax.ShapeDtypeStruct((N, Cout, HW), jnp.bfloat16),
        grid_spec=pltpu.PrefetchScalarGridSpec(
            num_scalar_prefetch=0,
            grid=grid,
            in_specs=[
                pl.BlockSpec((None, Ci, block_m), lambda n, j: (n, 0, j)),
                pl.BlockSpec((Cout, Ci), lambda n, j: (0, 0)),
                pl.BlockSpec((Cout, 1), lambda n, j: (0, 0)),
            ],
            out_specs=pl.BlockSpec((None, Cout, block_m), lambda n, j: (n, 0, j)),
        ),
        compiler_params=pltpu.CompilerParams(
            dimension_semantics=("parallel", "parallel"),
            vmem_limit_bytes=48 * 1024 * 1024,   # fits v7x's 64 MiB physical with headroom
        ),
        cost_estimate=cost,
    )(x, weight_oc, bias_col)


# -----------------------------------------------------------------------------
# FSA forward (all glue stays NCHW / channel-major; resize = two MXU einsums)
# -----------------------------------------------------------------------------
def fsa_forward(x_list, target, weight, bias):
    """
    x_list: list of (N, Ci, Hi, Wi) float32 arrays (NCHW, like PyTorch).
    target: (N, Ct, Ht, Wt) — only its spatial size is used.
    weight: (sum(Ci), Cout) — nn.Conv2d 1x1 weight, stored transposed.
    bias:   (Cout,)
    returns (N, Cout, Ht, Wt) float32, NCHW.
    """
    Ht, Wt = target.shape[2], target.shape[3]
    Cout = weight.shape[1]

    w_oc = weight.T.astype(jnp.bfloat16)                       # (Cout, sum(Ci))
    b_col = bias.astype(jnp.float32).reshape(Cout, 1)
    b_zero = jnp.zeros((Cout, 1), jnp.float32)

    out = None
    c_off = 0
    for idx, x in enumerate(x_list):
        N, Ci, Hi, Wi = x.shape
        w_i = w_oc[:, c_off:c_off + Ci]
        c_off += Ci

        # NCHW -> (N, Ci, HW) is a free reshape; only the bf16 cast touches HBM.
        x_bf = x.reshape(N, Ci, Hi * Wi).astype(jnp.bfloat16)

        # Bias only for input 0: bilinear align_corners interpolation preserves
        # constants (rows of A sum to 1), so
        #   resize(W0 x0 + b) + sum_i resize(Wi xi) == conv1x1(cat(resize(xi))) + b
        b_i = b_col if idx == 0 else b_zero

        y = conv1x1_nchw_pallas(x_bf, w_i, b_i)                # (N, Cout, HW) bf16
        y = y.reshape(N, Cout, Hi, Wi)

        if (Hi, Wi) != (Ht, Wt):
            Ay = jnp.asarray(_interp_matrix(Hi, Ht), dtype=jnp.bfloat16)   # (Ht, Hi)
            Ax = jnp.asarray(_interp_matrix(Wi, Wt), dtype=jnp.bfloat16)   # (Wt, Wi)
            t = jnp.einsum("Hh,nchw->ncHw", Ay, y,
                           preferred_element_type=jnp.float32).astype(jnp.bfloat16)
            y = jnp.einsum("Ww,ncHw->ncHW", Ax, t,
                           preferred_element_type=jnp.float32)             # (N, Cout, Ht, Wt) f32
        else:
            y = y.astype(jnp.float32)

        out = y if out is None else out + y

    return out                                                  # already NCHW f32


# -----------------------------------------------------------------------------
# Pure-JAX f32 reference (original op order: resize -> concat -> 1x1 conv)
# -----------------------------------------------------------------------------
def _ref_bilinear_nchw(x, out_h, out_w):
    N, C, H, W = x.shape
    if (H, W) == (out_h, out_w):
        return x

    def coords(in_size, out_size):
        if out_size == 1:
            return jnp.zeros((1,), jnp.float32)
        return jnp.arange(out_size, dtype=jnp.float32) * ((in_size - 1) / (out_size - 1))

    ys = coords(H, out_h)
    xs = coords(W, out_w)
    y0 = jnp.clip(jnp.floor(ys).astype(jnp.int32), 0, H - 1)
    y1 = jnp.minimum(y0 + 1, H - 1)
    wy = (ys - y0.astype(jnp.float32))[None, None, :, None]
    x0 = jnp.clip(jnp.floor(xs).astype(jnp.int32), 0, W - 1)
    x1 = jnp.minimum(x0 + 1, W - 1)
    wx = (xs - x0.astype(jnp.float32))[None, None, None, :]
    top = x[:, :, y0, :] * (1.0 - wy) + x[:, :, y1, :] * wy
    return top[:, :, :, x0] * (1.0 - wx) + top[:, :, :, x1] * wx


# -----------------------------------------------------------------------------
# Demo / self-check
# -----------------------------------------------------------------------------
if __name__ == "__main__":
    key = jax.random.PRNGKey(0)
    k1, k2, k3, kw, kb = jax.random.split(key, 5)

    # small shapes: batch=2, two feature maps at different scales
    in_channels_list = [4, 8]
    out_channels = 4
    N = 2
    x1 = jax.random.normal(k1, (N, in_channels_list[0], 16, 16), jnp.float32)
    x2 = jax.random.normal(k2, (N, in_channels_list[1], 8, 8), jnp.float32)
    target = jax.random.normal(k3, (N, out_channels, 16, 16), jnp.float32)

    cin = sum(in_channels_list)
    # PyTorch Conv2d(cin, out, 1) weight (out, cin, 1, 1) stored here as (cin, out)
    w = jax.random.normal(kw, (cin, out_channels), jnp.float32) * 0.1
    b = jax.random.normal(kb, (out_channels,), jnp.float32) * 0.1

    fsa = jax.jit(fsa_forward)
    out = jax.block_until_ready(fsa([x1, x2], target, w, b))

    # reference: resize -> concat -> 1x1 conv, all f32, NCHW
    res = [_ref_bilinear_nchw(x, 16, 16) for x in (x1, x2)]
    cat = jnp.concatenate(res, axis=1)                              # (N, cin, 16, 16)
    ref = jnp.einsum("nchw,co->nohw", cat, w) + b[None, :, None, None]

    assert out.shape == (N, out_channels, 16, 16)
    # bf16 activations/weights in the kernel + bf16 resize -> loosened tolerance
    assert jnp.allclose(out, ref, atol=5e-2, rtol=5e-2), float(jnp.max(jnp.abs(out - ref)))

    print("KERNEL_OK")
</pallas_src>

<mosaic_0001>
module attributes {stable_mosaic.version = 11 : i64} {
  func.func @_fuse_kernel(%arg0: i32, %arg1: i32, %arg2: memref<1x4x256xbf16, #tpu.memory_space<vmem>>, %arg3: memref<4x4xbf16, #tpu.memory_space<vmem>>, %arg4: memref<4x1xf32, #tpu.memory_space<vmem>>, %arg5: memref<1x4x256xbf16, #tpu.memory_space<vmem>>) attributes {dimension_semantics = [#tpu.dimension_semantics<parallel>, #tpu.dimension_semantics<parallel>], iteration_bounds = array<i64: 2, 1>, scalar_prefetch = 0 : i64, scratch_operands = 0 : i64, tpu.core_type = #tpu.core_type<tc>, window_params = [{transform_indices = @transform_0, window_bounds = array<i64: 1, 4, 256>}, {pipeline_mode = #tpu.pipeline_mode<synchronous>, transform_indices = @transform_1, window_bounds = array<i64: 4, 4>}, {pipeline_mode = #tpu.pipeline_mode<synchronous>, transform_indices = @transform_2, window_bounds = array<i64: 4, 1>}, {transform_indices = @transform_3, window_bounds = array<i64: 1, 4, 256>}]} {
    %c0 = arith.constant 0 : index
    %c0_0 = arith.constant 0 : index
    %0 = vector.load %arg3[%c0, %c0_0] : memref<4x4xbf16, #tpu.memory_space<vmem>>, vector<4x4xbf16>
    %c0_1 = arith.constant 0 : index
    %c0_2 = arith.constant 0 : index
    %c0_3 = arith.constant 0 : index
    %1 = vector.load %arg2[%c0_1, %c0_2, %c0_3] : memref<1x4x256xbf16, #tpu.memory_space<vmem>>, vector<1x4x256xbf16>
    %2 = vector.shape_cast %1 : vector<1x4x256xbf16> to vector<4x256xbf16>
    %cst = arith.constant dense<0.000000e+00> : vector<4x256xf32>
    %3 = tpu.matmul %0, %2, %cst {dimension_numbers = #tpu.dot_dimension_numbers<[1], [0], [0], [1], [0, 0, 1, 1], [], []>} : vector<4x4xbf16>, vector<4x256xbf16>, vector<4x256xf32> -> vector<4x256xf32>
    %c0_4 = arith.constant 0 : index
    %c0_5 = arith.constant 0 : index
    %4 = vector.load %arg4[%c0_4, %c0_5] : memref<4x1xf32, #tpu.memory_space<vmem>>, vector<4x1xf32>
    %5 = vector.broadcast %4 : vector<4x1xf32> to vector<4x256xf32>
    %6 = arith.addf %3, %5 : vector<4x256xf32>
    %7 = arith.truncf %6 : vector<4x256xf32> to vector<4x256xbf16>
    %c0_6 = arith.constant 0 : index
    %c0_7 = arith.constant 0 : index
    %c0_8 = arith.constant 0 : index
    %8 = vector.load %arg5[%c0_6, %c0_7, %c0_8] : memref<1x4x256xbf16, #tpu.memory_space<vmem>>, vector<1x4x256xbf16>
    %9 = vector.shape_cast %8 : vector<1x4x256xbf16> to vector<4x256xbf16>
    %10 = vector.shape_cast %7 : vector<4x256xbf16> to vector<1x4x256xbf16>
    tpu.vector_store %arg5[%c0_6, %c0_7, %c0_8], %10 {strides = array<i32>} : memref<1x4x256xbf16, #tpu.memory_space<vmem>>, vector<1x4x256xbf16>,
    return
  }
  func.func @transform_0(%arg0: i32, %arg1: i32) -> (i32, i32, i32) {
    %c0_i32 = arith.constant 0 : i32
    %c0_i32_0 = arith.constant 0 : i32
    return %arg0, %c0_i32, %arg1 : i32, i32, i32
  }
  func.func @transform_1(%arg0: i32, %arg1: i32) -> (i32, i32) {
    %c0_i32 = arith.constant 0 : i32
    %c0_i32_0 = arith.constant 0 : i32
    %c0_i32_1 = arith.constant 0 : i32
    return %c0_i32, %c0_i32_0 : i32, i32
  }
  func.func @transform_2(%arg0: i32, %arg1: i32) -> (i32, i32) {
    %c0_i32 = arith.constant 0 : i32
    %c0_i32_0 = arith.constant 0 : i32
    %c0_i32_1 = arith.constant 0 : i32
    return %c0_i32, %c0_i32_0 : i32, i32
  }
  func.func @transform_3(%arg0: i32, %arg1: i32) -> (i32, i32, i32) {
    %c0_i32 = arith.constant 0 : i32
    %c0_i32_0 = arith.constant 0 : i32
    return %arg0, %c0_i32, %arg1 : i32, i32, i32
  }
}

module attributes {stable_mosaic.version = 11 : i64} {
  func.func @_fuse_kernel(%arg0: i32, %arg1: i32, %arg2: memref<1x8x64xbf16, #tpu.memory_space<vmem>>, %arg3: memref<4x8xbf16, #tpu.memory_space<vmem>>, %arg4: memref<4x1xf32, #tpu.memory_space<vmem>>, %arg5: memref<1x4x64xbf16, #tpu.memory_space<vmem>>) attributes {dimension_semantics = [#tpu.dimension_semantics<parallel>, #tpu.dimension_semantics<parallel>], iteration_bounds = array<i64: 2, 1>, scalar_prefetch = 0 : i64, scratch_operands = 0 : i64, tpu.core_type = #tpu.core_type<tc>, window_params = [{transform_indices = @transform_0, window_bounds = array<i64: 1, 8, 64>}, {pipeline_mode = #tpu.pipeline_mode<synchronous>, transform_indices = @transform_1, window_bounds = array<i64: 4, 8>}, {pipeline_mode = #tpu.pipeline_mode<synchronous>, transform_indices = @transform_2, window_bounds = array<i64: 4, 1>}, {transform_indices = @transform_3, window_bounds = array<i64: 1, 4, 64>}]} {
    %c0 = arith.constant 0 : index
    %c0_0 = arith.constant 0 : index
    %0 = vector.load %arg3[%c0, %c0_0] : memref<4x8xbf16, #tpu.memory_space<vmem>>, vector<4x8xbf16>
    %c0_1 = arith.constant 0 : index
    %c0_2 = arith.constant 0 : index
    %c0_3 = arith.constant 0 : index
    %1 = vector.load %arg2[%c0_1, %c0_2, %c0_3] : memref<1x8x64xbf16, #tpu.memory_space<vmem>>, vector<1x8x64xbf16>
    %2 = vector.shape_cast %1 : vector<1x8x64xbf16> to vector<8x64xbf16>
    %cst = arith.constant dense<0.000000e+00> : vector<4x64xf32>
    %3 = tpu.matmul %0, %2, %cst {dimension_numbers = #tpu.dot_dimension_numbers<[1], [0], [0], [1], [0, 0, 1, 1], [], []>} : vector<4x8xbf16>, vector<8x64xbf16>, vector<4x64xf32> -> vector<4x64xf32>
    %c0_4 = arith.constant 0 : index
    %c0_5 = arith.constant 0 : index
    %4 = vector.load %arg4[%c0_4, %c0_5] : memref<4x1xf32, #tpu.memory_space<vmem>>, vector<4x1xf32>
    %5 = vector.broadcast %4 : vector<4x1xf32> to vector<4x64xf32>
    %6 = arith.addf %3, %5 : vector<4x64xf32>
    %7 = arith.truncf %6 : vector<4x64xf32> to vector<4x64xbf16>
    %c0_6 = arith.constant 0 : index
    %c0_7 = arith.constant 0 : index
    %c0_8 = arith.constant 0 : index
    %8 = vector.load %arg5[%c0_6, %c0_7, %c0_8] : memref<1x4x64xbf16, #tpu.memory_space<vmem>>, vector<1x4x64xbf16>
    %9 = vector.shape_cast %8 : vector<1x4x64xbf16> to vector<4x64xbf16>
    %10 = vector.shape_cast %7 : vector<4x64xbf16> to vector<1x4x64xbf16>
    tpu.vector_store %arg5[%c0_6, %c0_7, %c0_8], %10 {strides = array<i32>} : memref<1x4x64xbf16, #tpu.memory_space<vmem>>, vector<1x4x64xbf16>,
    return
  }
  func.func @transform_0(%arg0: i32, %arg1: i32) -> (i32, i32, i32) {
    %c0_i32 = arith.constant 0 : i32
    %c0_i32_0 = arith.constant 0 : i32
    return %arg0, %c0_i32, %arg1 : i32, i32, i32
  }
  func.func @transform_1(%arg0: i32, %arg1: i32) -> (i32, i32) {
    %c0_i32 = arith.constant 0 : i32
    %c0_i32_0 = arith.constant 0 : i32
    %c0_i32_1 = arith.constant 0 : i32
    return %c0_i32, %c0_i32_0 : i32, i32
  }
  func.func @transform_2(%arg0: i32, %arg1: i32) -> (i32, i32) {
    %c0_i32 = arith.constant 0 : i32
    %c0_i32_0 = arith.constant 0 : i32
    %c0_i32_1 = arith.constant 0 : i32
    return %c0_i32, %c0_i32_0 : i32, i32
  }
  func.func @transform_3(%arg0: i32, %arg1: i32) -> (i32, i32, i32) {
    %c0_i32 = arith.constant 0 : i32
    %c0_i32_0 = arith.constant 0 : i32
    return %arg0, %c0_i32, %arg1 : i32, i32, i32
  }
}

</mosaic_0001>

<bundles_post_ra>
// kernel: fsa_forward.3
= control target key start
LH: loop header
LB: loop body
LE: loop exit
PB: predicated region body
PF: predicated region fallthrough
CT: control target
= control target key end

     0   :  { %s424_s12 = smov 0   ;;  %s426_s13 = smov 0   ;;  %s463_s0 = inlined_call_operand.vmem [shape: bf16[2,8,64], index: 0, kind: input, shape index: {}]   ;;  %s464_s1 = inlined_call_operand.vmem [shape: bf16[4,8], index: 1, kind: input, shape index: {}]   ;;  %s465_s2 = inlined_call_operand.vmem [shape: f32[4,1], index: 2, kind: input, shape index: {}]   ;;  %s466_s3 = inlined_call_operand.vmem [shape: bf16[2,4,64], index: 3, kind: output, shape index: {}]  }
   0x1   :  { %s428_s14 = smov 0  }
   0x2 LB: > { %s25_s15 = sadd.s32 1, %s395_s13  ;;  %p335_p0 = scmp.ge.s32.totalorder %s399_s14, 1  ;;  %s399_s14 = sphi %s428_s14, %s13_s14   ;;  %s395_s13 = sphi %s426_s13, %s468_s13   ;;  %s391_s12 = sphi %s424_s12, %s467_s12  }
   0x3   : > { %p27_p1 = scmp.ge.s32.totalorder %s25_s15, 2  ;;  %p155_p2 = scmp.lt.s32.totalorder %s399_s14, 3 }
   0x5   : > { %s470_s15 = smov (%p27_p1, %s25_s15), 0  ;;  %p156_p3 = pnand %p335_p0, %p155_p2 }
   0x6   : > { %p183_p4 = scmp.lt.s32.totalorder (!%p156_p3), %s391_s12, 1 }
   0x7   : > { %159 = sbr.rel (%p156_p3) target bundleno = 219 (0xdb), region = 32 }
   0xc   : > { %v401_v0 = vmov 0.0   ;;  %vm402_vm0 = vmmov 0   ;;  %v200_v1 = vld [vmem:[%s465_s2] sm:$0xf]  ;;  %s472_s12 = smov (!%p183_p4, %s391_s12), 1  ;;  %v403_v2 = vmov 0  }
   0xd   : > { %343 = vmatprep.subr.bf16.mxu0 %v401_v0  ;;  %345 = vmatprep.mubr.msk.bf16.mxu0 %vm402_vm0, %v401_v0  ;;  %s336_s18 = sshll.u32 %s472_s12, 2  ;;  %vm210_vm1 = vcmask 1043456   ;;  %v198_v5 = vld [vmem:[%s464_s1] sm:$0x3]  ;;  %vm206_vm2 = vcmask 64512   ;;  %s337_s24 = sshll.u32 %s472_s12, 1 }
   0xe   : > { %376 = vset.pattern.permute.xlu0 %v403_v2  ;;  %s189_s21 = scalar_lea.vmem %s463_s0, %s336_s18  ;;  %s196_s27 = scalar_lea.vmem %s466_s3, %s337_s24  ;;  %vm255_vm3 = vcmask 517120  }
   0xf   : > { %203 = vperm.xlu0 %376, %v200_v1   ;;  %v199_v3 = vld [vmem:[%s189_s21] sm:$0xf] }
  0x10   : > { %v212_v4 = vsel %vm210_vm1, %v199_v3, 0 }
  0x11   : > { %344 = vmatpush3.bf16.msra.mxu0 %v212_v4 }
  0x14   : > { %346 = vmatmul.mubr.msk.bf16.vlgmr.msra.gmra.mxu0 %vm206_vm2, %v198_v5 }
  0x8a   : > { %v204_v6 = vpop.permute.xlu0 %203 }
  0xd4   : > { %v248_v7 = vpop.f32.mrf.mxu0 }
  0xd5   : > { %v249_v8 = vadd.f32 %v248_v7, %v204_v6 }
  0xd6   : > { %v347_v9 = vpop.f32.mrf.mxu0 }
  0xd7   : > { %v254_v10 = vpack.c.bf16 %v249_v8, %v249_v8 }
  0xd8   : > { %v251_v11 = vpop.f32.mrf.mxu0 }
  0xd9   : > { %256 = vst.msk [vmem:[%s196_s27] sm:$0x3] %vm255_vm3, %v254_v10 }
  0xda   : > { %v348_v12 = vpop.f32.mrf.mxu0 }
  0xdb PF: > { %s13_s14 = sadd.s32 1, %s399_s14   ;;  %s467_s12 = smov %s395_s13 }
  0xdc   : > { %p10_p5 = scmp.ge.s32.totalorder %s13_s14, 4   ;;  %s468_s13 = smov %s470_s15 }
  0xde   :  { %12 = sbr.rel (!%p10_p5) target bundleno = 2 (0x2), region = 62 }

// kernel: fsa_forward.2
= control target key start
LH: loop header
LB: loop body
LE: loop exit
PB: predicated region body
PF: predicated region fallthrough
CT: control target
= control target key end

     0   :  { %s470_s12 = smov 0   ;;  %s472_s13 = smov 0   ;;  %s509_s0 = inlined_call_operand.vmem [shape: bf16[2,4,256], index: 0, kind: input, shape index: {}]   ;;  %s510_s1 = inlined_call_operand.vmem [shape: bf16[4,4], index: 1, kind: input, shape index: {}]   ;;  %s511_s2 = inlined_call_operand.vmem [shape: f32[4,1], index: 2, kind: input, shape index: {}]   ;;  %s512_s3 = inlined_call_operand.vmem [shape: bf16[2,4,256], index: 3, kind: output, shape index: {}]  }
   0x1   :  { %s474_s14 = smov 0  }
   0x2 LB: > { %s25_s15 = sadd.s32 1, %s443_s13  ;;  %p385_p0 = scmp.ge.s32.totalorder %s447_s14, 1  ;;  %s447_s14 = sphi %s474_s14, %s13_s14   ;;  %s443_s13 = sphi %s472_s13, %s514_s13   ;;  %s439_s12 = sphi %s470_s12, %s513_s12  }
   0x3   : > { %p27_p1 = scmp.ge.s32.totalorder %s25_s15, 2  ;;  %p158_p2 = scmp.lt.s32.totalorder %s447_s14, 3 }
   0x5   : > { %s516_s15 = smov (%p27_p1, %s25_s15), 0  ;;  %p159_p3 = pnand %p385_p0, %p158_p2 }
   0x6   : > { %p191_p4 = scmp.lt.s32.totalorder (!%p159_p3), %s439_s12, 1 }
   0x7   : > { %162 = sbr.rel (%p159_p3) target bundleno = 222 (0xde), region = 32 }
   0xc   : > { %v449_v0 = vmov 0   ;;  %v213_v1 = vld [vmem:[%s511_s2] sm:$0xf]  ;;  %s518_s12 = smov (!%p191_p4, %s439_s12), 1  ;;  %vm232_vm0 = vcmask 1041408   ;;  %vm228_vm1 = vcmask 31744  }
   0xd   : > { %271 = vmatprep.mubr.bf16.mxu0 %v449_v0  ;;  %424 = vset.pattern.permute.xlu0 %v449_v0  ;;  %s397_s18 = sshll.u32 %s518_s12, 2  ;;  %v211_v5 = vld [vmem:[%s510_s1] sm:$0x3] }
   0xe   : > { %216 = vperm.xlu0 %424, %v213_v1   ;;  %s198_s21 = scalar_lea.vmem %s509_s0, %s397_s18  ;;  %s208_s26 = scalar_lea.vmem %s512_s3, %s397_s18 }
   0xf   : > { %v390_v2 = vld.sshfl [vmem:[%s198_s21] sm:$0x33 pattern:$0x76325410] }
  0x10   : > { %v227_v3 = vcombine.high %v390_v2, %v390_v2  ;;  %v234_v4 = vsel %vm232_vm0, %v390_v2, 0 }
  0x12   : > { %391 = vmatprep.subr.msk.bf16.mxu0 %vm232_vm0, %v227_v3 }
  0x13   : > { %254 = vmatpush1.bf16.msra.mxu0 %v234_v4 }
  0x16   : > { %392 = vmatmul.mubr.msk.bf16.vlgmr.msra.gmra.mxu0 %vm228_vm1, %v211_v5 }
  0x89   : > { %v217_v6 = vpop.permute.xlu0 %216 }
  0xd6   : > { %v273_v7 = vpop.f32.mrf.mxu0 }
  0xd7   : > { %v274_v9 = vadd.f32 %v273_v7, %v217_v6 }
  0xd8   : > { %v275_v8 = vpop.f32.mrf.mxu0 }
  0xd9   : > { %v276_v10 = vadd.f32 %v275_v8, %v217_v6 }
  0xda   : > { %v277_v11 = vpop.f32.mrf.mxu0 }
  0xdb   : > { %v393_v12 = vpack.c.bf16 %v276_v10, %v274_v9 }
  0xdc   : > { %v278_v13 = vpop.f32.mrf.mxu0 }
  0xdd   : > { %394 = vst.sshfl [vmem:[%s208_s26] sm:$0x33 pattern:$0x76325410] %v393_v12 }
  0xde PF: > { %s13_s14 = sadd.s32 1, %s447_s14   ;;  %s513_s12 = smov %s443_s13 }
  0xdf   : > { %p10_p5 = scmp.ge.s32.totalorder %s13_s14, 4   ;;  %s514_s13 = smov %s516_s15 }
  0xe1   :  { %12 = sbr.rel (!%p10_p5) target bundleno = 2 (0x2), region = 62 }

</bundles_post_ra>
